<compile_context>
chip_gen: v6e
topology: v6e:2x2x1
jax: 0.10.0
libtpu: 0.0.40
codegen_flags: <defaults>
</compile_context>

<pallas_src>
import jax
import jax.numpy as jnp
from jax.experimental import pallas as pl
from jax.experimental.pallas import tpu as pltpu


# Per-tile VMEM budget. Auto-pipelining double-buffers in + out
# (~4 buffers live), so 4 MiB/tile => ~16 MiB working set, which fits the
# scoped VMEM limit on every generation (v5e/v6e 128 MiB, v7x 64 MiB).
_TILE_BUDGET_BYTES = 4 * 1024 * 1024
_VMEM_LIMIT_BYTES = 32 * 1024 * 1024


def _identity_kernel(x_ref, o_ref):
    # Pure elementwise copy of the current VMEM tile.
    o_ref[...] = x_ref[...]


def _round_up(v, m):
    return ((v + m - 1) // m) * m


def _normalize_user_tile(t, dim, align):
    """Round a user tile to a legal BlockSpec size: multiple of `align` or full dim."""
    if t is None or t >= dim:
        return dim
    t = _round_up(max(t, 1), align)
    return dim if t >= dim else t


def _auto_tiles(B, F, itemsize):
    """Pick the largest (8,128)-aligned (or full-dim) tile under the VMEM budget."""
    # Whole array fits in one tile -> single grid point, no pipelining overhead.
    if B * F * itemsize <= _TILE_BUDGET_BYTES:
        return B, F

    # Lane axis: prefer full F (lane-dense stores). Only shrink it if even an
    # 8-row slab of full F blows the budget; then use a large multiple of 128.
    tf = F
    if F * 8 * itemsize > _TILE_BUDGET_BYTES:
        tf = (_TILE_BUDGET_BYTES // (8 * itemsize) // 128) * 128
        tf = max(128, min(tf, F))
        if tf < F:
            tf = (tf // 128) * 128  # keep multiple-of-128 when not full dim

    # Sublane axis: largest multiple of 8 that fits the budget with this tf.
    tb = (_TILE_BUDGET_BYTES // (tf * itemsize) // 8) * 8
    tb = max(8, tb)
    if tb >= B:
        tb = B
    return tb, tf


def concat_forward(x, z=None):
    """Optimal identity forward of `Concat`: no data movement at all.

    `z` is the module's parameter; it is intentionally unused (matching the
    PyTorch forward), but accepted for API parity.
    """
    del z
    return x


def concat_forward_pallas(x, z=None, *, tile_b=None, tile_f=None):
    """Identity forward computed by a Pallas copy kernel (for demonstration).

    The output aliases the input buffer (input_output_aliases), so the custom
    call itself does not allocate a second HBM output buffer.
    """
    del z  # unused by forward, matching PyTorch semantics
    B, F = x.shape
    itemsize = jnp.dtype(x.dtype).itemsize

    if tile_b is None and tile_f is None:
        tb, tf = _auto_tiles(B, F, itemsize)
    else:
        tb = _normalize_user_tile(tile_b, B, 8)
        tf = _normalize_user_tile(tile_f, F, 128)

    grid = (pl.cdiv(B, tb), pl.cdiv(F, tf))

    return pl.pallas_call(
        _identity_kernel,
        out_shape=jax.ShapeDtypeStruct((B, F), x.dtype),
        grid_spec=pltpu.PrefetchScalarGridSpec(
            num_scalar_prefetch=0,
            grid=grid,
            in_specs=[pl.BlockSpec((tb, tf), lambda i, j: (i, j))],
            out_specs=pl.BlockSpec((tb, tf), lambda i, j: (i, j)),
        ),
        # Output 0 aliases input 0: avoids a second HBM buffer for the copy.
        input_output_aliases={0: 0},
        compiler_params=pltpu.CompilerParams(
            dimension_semantics=("parallel", "parallel"),
            vmem_limit_bytes=_VMEM_LIMIT_BYTES,
        ),
    )(x)


if __name__ == "__main__":
    batch_size = 2
    feature_dim = 32

    key = jax.random.PRNGKey(0)
    kx, kz, kx2 = jax.random.split(key, 3)

    # Input x: shape consistent with the module's parameter convention.
    x = jax.random.normal(kx, (batch_size, feature_dim), dtype=jnp.float32)

    # Deterministic init of the module parameter z (unused by forward).
    z = jax.random.normal(kz, (batch_size, feature_dim), dtype=jnp.float32)

    # Optimal identity path (no data movement).
    out_fast = jax.block_until_ready(concat_forward(x, z))
    assert out_fast.shape == x.shape and out_fast.dtype == x.dtype
    assert bool(jnp.allclose(out_fast, x))

    # Pallas kernel path — small input takes the single-block fast path.
    out = jax.block_until_ready(concat_forward_pallas(x, z))
    assert out.shape == x.shape
    assert out.dtype == x.dtype
    assert bool(jnp.allclose(out, x))

    # Exercise the tiled path with explicit (8,128)-aligned tiles on a
    # slightly larger (still small) input.
    x2 = jax.random.normal(kx2, (512, 1024), dtype=jnp.float32)
    out2 = jax.block_until_ready(concat_forward_pallas(x2, tile_b=64, tile_f=256))
    assert bool(jnp.allclose(out2, x2))

    print("KERNEL_OK")
</pallas_src>

<mosaic_0001>
module attributes {stable_mosaic.version = 11 : i64} {
  func.func @_identity_kernel(%arg0: i32, %arg1: i32, %arg2: memref<2x32xf32, #tpu.memory_space<vmem>>, %arg3: memref<2x32xf32, #tpu.memory_space<vmem>>) attributes {dimension_semantics = [#tpu.dimension_semantics<parallel>, #tpu.dimension_semantics<parallel>], iteration_bounds = array<i64: 1, 1>, scalar_prefetch = 0 : i64, scratch_operands = 0 : i64, tpu.core_type = #tpu.core_type<tc>, window_params = [{transform_indices = @transform_0, window_bounds = array<i64: 2, 32>}, {transform_indices = @transform_1, window_bounds = array<i64: 2, 32>}]} {
    %c0 = arith.constant 0 : index
    %c0_0 = arith.constant 0 : index
    %0 = vector.load %arg2[%c0, %c0_0] : memref<2x32xf32, #tpu.memory_space<vmem>>, vector<2x32xf32>
    %c0_1 = arith.constant 0 : index
    %c0_2 = arith.constant 0 : index
    %1 = vector.load %arg3[%c0_1, %c0_2] : memref<2x32xf32, #tpu.memory_space<vmem>>, vector<2x32xf32>
    tpu.vector_store %arg3[%c0_1, %c0_2], %0 {strides = array<i32>} : memref<2x32xf32, #tpu.memory_space<vmem>>, vector<2x32xf32>,
    return
  }
  func.func @transform_0(%arg0: i32, %arg1: i32) -> (i32, i32) {
    %c0_i32 = arith.constant 0 : i32
    return %arg0, %arg1 : i32, i32
  }
  func.func @transform_1(%arg0: i32, %arg1: i32) -> (i32, i32) {
    %c0_i32 = arith.constant 0 : i32
    return %arg0, %arg1 : i32, i32
  }
}

</mosaic_0001>

<bundles_post_ra>
// kernel: tpu_custom_call.1
= control target key start
LH: loop header
LB: loop body
LE: loop exit
PB: predicated region body
PF: predicated region fallthrough
CT: control target
= control target key end

     0   :  { %6 = vsyncpa [#allocation3], 0  ;;  %s103_s0 = inlined_call_operand.hbm [shape: f32[2,32], index: 0, kind: input, shape index: {}, may-alias: {0,1}]   ;;  %s104_s1 = inlined_call_operand.hbm [shape: f32[2,32], index: 1, kind: output, shape index: {}, may-alias: {0,1}]  }
   0x1   :  { %7 = vsyncpa [#allocation4], 0  ;;  %s85_s6 = smov [#allocation2]  }
   0x2   :  { %s14_s7 = sshll.u32 %s85_s6, 4  ;;  %s15_s7 = int_to_ptr.vmem [resolvable:$true] %s14_s7 }
   0x3   :  { %s49_s8 = scalar_lea.vmem %s15_s7, 32  ;;  %p54_p1 = scmp.lt.s32.totalorder %s15_s7, %s15_s7 }
   0x4   :  { %p50_p0 = scmp.ne.s32.totalorder %s15_s7, %s49_s8  ;;  %p55_p2 = scmp.lt.s32.totalorder %s49_s8, %s49_s8 }
   0x6   :  { %p56_p3 = por %p55_p2, %p54_p1 }
   0x8   :  { %p57_p4 = pnand %p56_p3, %p50_p0 }
   0xa   :  { %60 = shalt.err (!%p57_p4)
}
   0xb   :  { %17 = dma.hbm_to_vmem [thread:$0]  %s103_s0, 32, %s15_s7, [#allocation3]  }
   0xc   :  { %81 = dma.done.wait [#allocation3], 32  }
   0xd   :  { %82 = vsyncadd [#allocation3], 4294967264  ;;  %s86_s11 = smov [#allocation5]   ;;  %vm22_vm0 = vcmask 254976   ;;  %v21_v0 = vld [vmem:[#allocation2] sm:$0x3] }
   0xe   :  { %s30_s12 = sshll.u32 %s86_s11, 4  ;;  %23 = vst.msk [vmem:[#allocation5] sm:$0x3] %vm22_vm0, %v21_v0  ;;  %s31_s12 = int_to_ptr.vmem [resolvable:$true] %s30_s12 }
   0xf   :  { %s61_s13 = scalar_lea.vmem %s31_s12, 32  ;;  %p66_p6 = scmp.lt.s32.totalorder %s31_s12, %s31_s12 }
  0x10   :  { %p62_p5 = scmp.ne.s32.totalorder %s31_s12, %s61_s13  ;;  %p67_p7 = scmp.lt.s32.totalorder %s61_s13, %s61_s13 }
  0x12   :  { %p68_p8 = por %p67_p7, %p66_p6 }
  0x14   :  { %p69_p9 = pnand %p68_p8, %p62_p5 }
  0x16   :  { %72 = shalt.err (!%p69_p9)
}
  0x17   :  { %33 = dma.vmem_to_hbm [thread:$0]  %s31_s12, 32, %s104_s1, [#allocation4]  }
  0x18   :  { %83 = dma.done.wait [#allocation4], 32  }
  0x19   :  { %84 = vsyncadd [#allocation4], 4294967264 }
  0x1a   :  { %37 = vsyncpa [#allocation3], 1 }
  0x1b   :  { %38 = vsyncpa [#allocation4], 1 }

</bundles_post_ra>
